<compile_context>
chip_gen: v7x
topology: tpu7x:2x2x1
jax: 0.10.0
libtpu: 0.0.40
codegen_flags: <defaults>
</compile_context>

<pallas_src>
import jax
import jax.numpy as jnp
from jax.experimental import pallas as pl
from jax.experimental.pallas import tpu as pltpu


def _cdiv(a, b):
    return -(-a // b)


def _round_up(n, m):
    return _cdiv(n, m) * m


def _static_pow(base, k):
    """base: (1, TB) array, k: static float exponent (k != 0)."""
    if k == 0.0:
        return None
    if float(k).is_integer() and abs(k) <= 32.0:
        n = int(abs(k))
        # exponentiation by squaring -> pure VPU multiplies
        result = None
        sq = base
        m = n
        while m > 0:
            if m & 1:
                result = sq if result is None else result * sq
            m >>= 1
            if m:
                sq = sq * sq
        if k < 0.0:
            result = 1.0 / result
        return result
    # genuinely non-integer exponent: keep torch.pow semantics (NaN for x<0)
    return jnp.power(base, k)


def _make_transform_kernel(phi):
    phi = tuple(tuple(float(k) for k in row) for row in phi)

    def kernel(x_ref, o_ref):
        x = x_ref[...]                      # (D, TB), batch on lanes
        factor_cache = {}                   # reuse x_j ** k across features

        def factor(j, k):
            key = (j, k)
            if key not in factor_cache:
                factor_cache[key] = _static_pow(x[j:j + 1, :], k)  # (1, TB)
            return factor_cache[key]

        rows = []
        for row in phi:
            acc = None
            for j, k in enumerate(row):
                if k == 0.0:
                    continue                # pow(x, 0) == 1 -> skip factor
                f = factor(j, k)
                acc = f if acc is None else acc * f
            if acc is None:                 # all-zero exponent row -> ones
                acc = jnp.ones_like(x[0:1, :])
            rows.append(acc)
        # single lane-dense store of the whole (P, TB) tile
        o_ref[...] = jnp.concatenate(rows, axis=0)

    return kernel


def transform_input(x, phi, *, lane_tile=65536):
    """JAX/Pallas equivalent of TRANSFORM_INPUT.forward."""
    phi = tuple(tuple(float(k) for k in row) for row in phi)
    P = len(phi)

    orig_1d = (x.ndim == 1)
    x2 = x[None, :] if orig_1d else x
    B, D = x2.shape
    itemsize = jnp.dtype(x2.dtype).itemsize

    # Keep double-buffered (in + out) tiles comfortably inside scoped VMEM on
    # every generation (v7x has only 64 MiB physical / 32 MiB default scoped).
    vmem_budget = 16 * 1024 * 1024
    max_tb = max(128, (vmem_budget // (2 * (D + P) * itemsize)) // 128 * 128)
    lane_tile = min(lane_tile, max_tb)

    # Choose a lane tile (multiple of 128) so padding waste is small and large
    # batches get a multi-step grid (megacore sharding via "parallel").
    n_steps = max(1, _cdiv(B, lane_tile))
    TB = _round_up(_cdiv(B, n_steps), 128)
    B_pad = TB * n_steps

    # Batch on the lane (fast) axis: (D, B_pad).
    xt = jnp.transpose(x2)
    if B_pad != B:
        xt = jnp.pad(xt, ((0, 0), (0, B_pad - B)), constant_values=1.0)

    kernel = _make_transform_kernel(phi)
    out_t = pl.pallas_call(
        kernel,
        out_shape=jax.ShapeDtypeStruct((P, B_pad), x2.dtype),
        grid=(n_steps,),
        in_specs=[pl.BlockSpec((D, TB), lambda i: (0, i))],
        out_specs=pl.BlockSpec((P, TB), lambda i: (0, i)),
        compiler_params=pltpu.CompilerParams(
            dimension_semantics=("parallel",)),
    )(xt)

    out = jnp.transpose(out_t[:, :B])       # (B, P)
    return out[0] if orig_1d else out


def _reference(x, phi):
    """Pure-JAX reference mirroring the PyTorch loops."""
    phi = tuple(tuple(float(k) for k in row) for row in phi)
    x2 = x[None, :] if x.ndim == 1 else x
    cols = []
    for row in phi:
        acc = jnp.ones_like(x2[:, 0])
        for j, k in enumerate(row):
            acc = acc * jnp.power(x2[:, j], k)
        cols.append(acc)
    out = jnp.stack(cols, axis=-1)
    return out[0] if x.ndim == 1 else out


if __name__ == "__main__":
    # Deterministic synthetic setup: D=8 input variables, P=6 monomial
    # features (P <= D, as the PyTorch module requires).
    # phi[i][j] = exponent of variable j in output feature i.
    phi = (
        (1.0, 0.0, 0.0, 0.0, 0.0, 0.0, 0.0, 0.0),
        (0.0, 2.0, 0.0, 0.0, 0.0, 0.0, 0.0, 0.0),
        (1.0, 1.0, 0.0, 0.0, 0.0, 0.0, 0.0, 0.0),
        (0.0, 0.0, 3.0, 0.0, 0.0, 1.0, 0.0, 0.0),
        (2.0, 0.0, 0.0, 1.0, 0.0, 0.0, 0.0, 0.0),
        (0.0, 0.0, 0.0, 0.0, 0.0, 0.0, 0.0, 0.0),
    )

    key = jax.random.PRNGKey(0)
    k2d, kbig, k1d, kpos = jax.random.split(key, 4)

    # 2D (batched) case: (B=8, D=8)
    x2d = jax.random.normal(k2d, (8, 8), dtype=jnp.float32)
    out2d = jax.block_until_ready(transform_input(x2d, phi))
    assert out2d.shape == (8, len(phi))
    assert jnp.allclose(out2d, _reference(x2d, phi), rtol=1e-5, atol=1e-5)

    # 2D case with batch not a multiple of the lane tile (exercises padding).
    xbig = jax.random.normal(kbig, (200, 8), dtype=jnp.float32)
    outbig = jax.block_until_ready(transform_input(xbig, phi))
    assert outbig.shape == (200, len(phi))
    assert jnp.allclose(outbig, _reference(xbig, phi), rtol=1e-5, atol=1e-5)

    # 1D case: (D=8,)
    x1d = jax.random.normal(k1d, (8,), dtype=jnp.float32)
    out1d = jax.block_until_ready(transform_input(x1d, phi))
    assert out1d.shape == (len(phi),)
    assert jnp.allclose(out1d, _reference(x1d, phi), rtol=1e-5, atol=1e-5)

    # Non-integer / negative exponents (jnp.power fallback + reciprocal path)
    # on strictly positive inputs.
    phi2 = (
        (0.5, 0.0, 0.0, 0.0, 0.0, 0.0, 0.0, 0.0),
        (0.0, -1.0, 0.0, 0.0, 0.0, 0.0, 0.0, 0.0),
        (1.5, 0.0, 1.0, 0.0, 0.0, 0.0, 0.0, 0.0),
        (0.0, 0.0, 0.0, 2.0, 0.0, 0.0, -2.0, 0.0),
    )
    xpos = jnp.abs(jax.random.normal(kpos, (16, 8), dtype=jnp.float32)) + 0.1
    outpos = jax.block_until_ready(transform_input(xpos, phi2))
    assert outpos.shape == (16, len(phi2))
    assert jnp.allclose(outpos, _reference(xpos, phi2), rtol=1e-5, atol=1e-5)

    print("KERNEL_OK")
</pallas_src>

<mosaic_0001>
module attributes {stable_mosaic.version = 11 : i64} {
  func.func @kernel(%arg0: i32, %arg1: memref<8x128xf32, #tpu.memory_space<vmem>>, %arg2: memref<6x128xf32, #tpu.memory_space<vmem>>) attributes {dimension_semantics = [#tpu.dimension_semantics<parallel>], iteration_bounds = array<i64: 1>, scalar_prefetch = 0 : i64, scratch_operands = 0 : i64, tpu.core_type = #tpu.core_type<tc>, window_params = [{transform_indices = @transform_0, window_bounds = array<i64: 8, 128>}, {transform_indices = @transform_1, window_bounds = array<i64: 6, 128>}]} {
    %c0 = arith.constant 0 : index
    %c0_0 = arith.constant 0 : index
    %0 = vector.load %arg1[%c0, %c0_0] : memref<8x128xf32, #tpu.memory_space<vmem>>, vector<8x128xf32>
    %1 = vector.extract_strided_slice %0 {offsets = [0, 0], sizes = [1, 128], strides = [1, 1]} : vector<8x128xf32> to vector<1x128xf32>
    %2 = vector.extract_strided_slice %0 {offsets = [1, 0], sizes = [1, 128], strides = [1, 1]} : vector<8x128xf32> to vector<1x128xf32>
    %3 = arith.mulf %2, %2 : vector<1x128xf32>
    %4 = vector.extract_strided_slice %0 {offsets = [1, 0], sizes = [1, 128], strides = [1, 1]} : vector<8x128xf32> to vector<1x128xf32>
    %5 = arith.mulf %1, %4 : vector<1x128xf32>
    %6 = vector.extract_strided_slice %0 {offsets = [2, 0], sizes = [1, 128], strides = [1, 1]} : vector<8x128xf32> to vector<1x128xf32>
    %7 = arith.mulf %6, %6 : vector<1x128xf32>
    %8 = arith.mulf %6, %7 : vector<1x128xf32>
    %9 = vector.extract_strided_slice %0 {offsets = [5, 0], sizes = [1, 128], strides = [1, 1]} : vector<8x128xf32> to vector<1x128xf32>
    %10 = arith.mulf %8, %9 : vector<1x128xf32>
    %11 = vector.extract_strided_slice %0 {offsets = [0, 0], sizes = [1, 128], strides = [1, 1]} : vector<8x128xf32> to vector<1x128xf32>
    %12 = arith.mulf %11, %11 : vector<1x128xf32>
    %13 = vector.extract_strided_slice %0 {offsets = [3, 0], sizes = [1, 128], strides = [1, 1]} : vector<8x128xf32> to vector<1x128xf32>
    %14 = arith.mulf %12, %13 : vector<1x128xf32>
    %cst = arith.constant 1.000000e+00 : f32
    %15 = vector.broadcast %cst : f32 to vector<1x128xf32>
    %16 = tpu.concatenate %1, %3, %5, %10, %14, %15 in 0 : vector<1x128xf32>, vector<1x128xf32>, vector<1x128xf32>, vector<1x128xf32>, vector<1x128xf32>, vector<1x128xf32> -> vector<6x128xf32>
    %c0_1 = arith.constant 0 : index
    %c0_2 = arith.constant 0 : index
    %17 = vector.load %arg2[%c0_1, %c0_2] : memref<6x128xf32, #tpu.memory_space<vmem>>, vector<6x128xf32>
    tpu.vector_store %arg2[%c0_1, %c0_2], %16 {strides = array<i32>} : memref<6x128xf32, #tpu.memory_space<vmem>>, vector<6x128xf32>,
    return
  }
  func.func @transform_0(%arg0: i32) -> (i32, i32) {
    %c0_i32 = arith.constant 0 : i32
    %c0_i32_0 = arith.constant 0 : i32
    return %c0_i32, %arg0 : i32, i32
  }
  func.func @transform_1(%arg0: i32) -> (i32, i32) {
    %c0_i32 = arith.constant 0 : i32
    %c0_i32_0 = arith.constant 0 : i32
    return %c0_i32, %arg0 : i32, i32
  }
}

</mosaic_0001>

<bundles_post_ra>
// kernel: tpu_custom_call.1
= control target key start
LH: loop header
LB: loop body
LE: loop exit
PB: predicated region body
PF: predicated region fallthrough
CT: control target
= control target key end

     0   :  { %6 = vsyncpa [#allocation3], 0  ;;  %s153_s0 = inlined_call_operand.hbm [shape: f32[8,128], index: 0, kind: input, shape index: {}]   ;;  %s154_s1 = inlined_call_operand.hbm [shape: f32[6,128], index: 1, kind: output, shape index: {}]  }
   0x1   :  { %7 = vsyncpa [#allocation4], 0  ;;  %s117_s6 = smov [#allocation2]   ;;  %s69_s10 = scalar_lea.hbm %s153_s0, 128 }
   0x2   :  { %s14_s7 = sshll.u32 %s117_s6, 4  ;;  %p70_p0 = scmp.ne.s32.totalorder %s153_s0, %s69_s10  ;;  %s15_s7 = int_to_ptr.vmem [resolvable:$true] %s14_s7 }
   0x3   :  { %p73_p1 = scmp.lt.u32.totalorder %s69_s10, %s153_s0 }
   0x5   :  { %p75_p2 = pnand %p73_p1, %p70_p0 }
   0x7   :  { %78 = shalt.err (!%p75_p2)
}
   0x8   :  { %s79_s15 = scalar_lea.vmem %s15_s7, 128  ;;  %p84_p4 = scmp.lt.s32.totalorder %s15_s7, %s15_s7 }
   0x9   :  { %p80_p3 = scmp.ne.s32.totalorder %s15_s7, %s79_s15  ;;  %p85_p5 = scmp.lt.s32.totalorder %s79_s15, %s79_s15 }
   0xb   :  { %p86_p6 = por %p85_p5, %p84_p4 }
   0xd   :  { %p87_p7 = pnand %p86_p6, %p80_p3 }
   0xf   :  { %90 = shalt.err (!%p87_p7)
}
  0x10   :  { %17 = dma.hbm_to_vmem [thread:$0]  %s153_s0, 128, %s15_s7, [#allocation3]  }
  0x11   :  { %113 = dma.done.wait [#allocation3], 128  }
  0x12   :  { %114 = vsyncadd [#allocation3], 4294967168  ;;  %v21_v0 = vld [vmem:[#allocation2] sm:$0xff]  ;;  %vm41_vm0 = vcmask 1040384   ;;  %vm43_vm1 = vcmask 1041408   ;;  %vm45_vm2 = vcmask 1042432  }
  0x13   :  { %v22_v1 = vmul.f32 %v21_v0, %v21_v0  ;;  %v24_v2 = vrot.slane %v21_v0, 1  ;;  %v28_v3 = vrot.slane %v21_v0, 3  ;;  %vm47_vm3 = vcmask 1043456   ;;  %s118_s0 = smov [#allocation5]  }
  0x14   :  { %s58_s18 = sshll.u32 %s118_s0, 4  ;;  %vm49_vm4 = vcmask 1044480   ;;  %s59_s18 = int_to_ptr.vmem [resolvable:$true] %s58_s18 }
  0x15   :  { %v26_v4 = vmul.f32 %v24_v2, %v21_v0  ;;  %v27_v5 = vmul.f32 %v22_v1, %v21_v0  ;;  %v31_v6 = vmul.f32 %v28_v3, %v22_v1  ;;  %v42_v7 = vsel %vm41_vm0, %v21_v0, %v22_v1  ;;  %s91_s19 = scalar_lea.vmem %s59_s18, 128  ;;  %p96_p9 = scmp.lt.s32.totalorder %s59_s18, %s59_s18 }
  0x16   :  { %p92_p8 = scmp.ne.s32.totalorder %s59_s18, %s91_s19  ;;  %p97_p10 = scmp.lt.s32.totalorder %s91_s19, %s91_s19 }
  0x17   :  { %v30_v8 = vmul.f32 %v28_v3, %v27_v5  ;;  %v33_v9 = vrot.slane %v26_v4, 6  ;;  %v39_v10 = vrot.slane %v31_v6, 4 }
  0x18   :  { %p98_p11 = por %p97_p10, %p96_p9 }
  0x19   :  { %v36_v11 = vrot.slane %v30_v8, 7  ;;  %v44_v12 = vsel %vm43_vm1, %v42_v7, %v33_v9 }
  0x1a   :  { %p99_p12 = pnand %p98_p11, %p92_p8 }
  0x1b   :  { %v46_v13 = vsel %vm45_vm2, %v44_v12, %v36_v11 }
  0x1c   :  { %v48_v14 = vsel %vm47_vm3, %v46_v13, %v39_v10 }
  0x1d   :  { %v50_v15 = vsel %vm49_vm4, %v48_v14, 1.0 }
  0x1e   :  { %51 = vst [vmem:[#allocation5] sm:$0x3f] %v50_v15 }
  0x1f   :  { %102 = shalt.err (!%p99_p12)
}
  0x20   :  { %s103_s22 = scalar_lea.hbm %s154_s1, 128 }
  0x21   :  { %p104_p13 = scmp.ne.s32.totalorder %s154_s1, %s103_s22  ;;  %p107_p0 = scmp.lt.u32.totalorder %s103_s22, %s154_s1 }
  0x23   :  { %p109_p1 = pnand %p107_p0, %p104_p13 }
  0x25   :  { %112 = shalt.err (!%p109_p1)
}
  0x26   :  { %61 = dma.vmem_to_hbm [thread:$0]  %s59_s18, 128, %s154_s1, [#allocation4]  }
  0x27   :  { %115 = dma.done.wait [#allocation4], 128  }
  0x28   :  { %116 = vsyncadd [#allocation4], 4294967168 }
  0x29   :  { %65 = vsyncpa [#allocation3], 1 }
  0x2a   :  { %66 = vsyncpa [#allocation4], 1 }

</bundles_post_ra>
